<compile_context>
chip_gen: v7x
topology: tpu7x:2x2x1
jax: 0.10.0
libtpu: 0.0.40
codegen_flags: <defaults>
</compile_context>

<pallas_src>
import jax
import jax.numpy as jnp
from jax.experimental import pallas as pl
from jax.experimental.pallas import tpu as pltpu

# Module constants (from __init__)
DT = 0.25
WHEEL_BASE = 1.0
WHEEL_RADIUS = 0.5

_LANE = 128          # TPU lane width (batch packs onto lanes, then sublane rows)
_SUBLANE = 8
# 1024 rows * 128 lanes = 131072 batch elements / grid step.
# Bytes/step = (3 in + 2 in + 3 out) * 1024 * 128 * 4 B = 4 MiB; ~8 MiB
# double-buffered -> fits default scoped VMEM on v5e/v6e/v7x.
_MAX_TILE_ROWS = 1024


def _round_up(x, m):
    return (x + m - 1) // m * m


def _choose_tile_rows(rows):
    """Pick a sublane-row tile: multiple of 8 (or == rows), >=2 grid steps when sensible."""
    if rows > _MAX_TILE_ROWS:
        return _MAX_TILE_ROWS
    if rows >= 2 * _SUBLANE:
        # Split into (at least) 2 grid steps so the "parallel" axis can shard
        # across v7x's two TensorCores; keep the tile a multiple of 8 so the
        # BlockSpec satisfies the (8, 128) layout constraint.
        return _round_up(pl.cdiv(rows, 2), _SUBLANE)
    # Tiny batch: single block whose second-minor dim equals the full array dim.
    return rows


def _diffdrive_kernel(state_ref, u_ref, out_ref):
    # state_ref: (3, tile_rows, 128) rows-major slabs [x, y, theta]
    # u_ref:     (2, tile_rows, 128)                  [l, r]
    # out_ref:   (3, tile_rows, 128)                  [dx, dy, dtheta]
    theta = state_ref[2]                              # (tile_rows, 128), dense vregs
    l = u_ref[0]
    r = u_ref[1]

    lin = (0.5 * WHEEL_RADIUS * DT) * (l + r)         # (tile_rows, 128)

    # Full-tile, unmasked stores (dense along both sublanes and lanes).
    out_ref[0] = lin * jnp.cos(theta)
    out_ref[1] = lin * jnp.sin(theta)
    out_ref[2] = ((WHEEL_RADIUS / WHEEL_BASE) * DT) * (r - l)


def diffdrive_dx(state, u):
    """Pallas implementation of DiffDriveDx.forward.

    state: (B, 3) float
    u:     (B, 2) float
    returns (B, 3) with state's dtype
    """
    B, n_state = state.shape
    _, n_ctrl = u.shape
    assert n_state == 3 and n_ctrl == 2

    # Component-major, lane-dense layout; two separate inputs (no concat copy).
    st = state.astype(jnp.float32).T                  # (3, B)
    ut = u.astype(jnp.float32).T                      # (2, B)

    # Pad only to a multiple of 128 lanes (not to a multiple of the tile).
    b_pad = _round_up(B, _LANE)
    if b_pad != B:
        st = jnp.pad(st, ((0, 0), (0, b_pad - B)))
        ut = jnp.pad(ut, ((0, 0), (0, b_pad - B)))
    rows = b_pad // _LANE

    st3 = st.reshape(3, rows, _LANE)
    ut3 = ut.reshape(2, rows, _LANE)

    tile_rows = _choose_tile_rows(rows)
    grid = (pl.cdiv(rows, tile_rows),)                # ragged last block OK

    out = pl.pallas_call(
        _diffdrive_kernel,
        out_shape=jax.ShapeDtypeStruct((3, rows, _LANE), jnp.float32),
        grid_spec=pltpu.PrefetchScalarGridSpec(
            num_scalar_prefetch=0,
            grid=grid,
            in_specs=[
                pl.BlockSpec((3, tile_rows, _LANE), lambda i: (0, i, 0)),
                pl.BlockSpec((2, tile_rows, _LANE), lambda i: (0, i, 0)),
            ],
            out_specs=pl.BlockSpec((3, tile_rows, _LANE), lambda i: (0, i, 0)),
        ),
        compiler_params=pltpu.CompilerParams(
            dimension_semantics=("parallel",),
        ),
        cost_estimate=pl.CostEstimate(
            flops=6 * B, transcendentals=2 * B, bytes_accessed=32 * B
        ),
    )(st3, ut3)

    out = out.reshape(3, b_pad)[:, :B].T              # (B, 3)
    return out.astype(state.dtype)


def diffdrive_dx_ref(state, u):
    # Pure-JAX reference mirroring the PyTorch forward.
    theta = state[:, 2]
    l, r = u[:, 0], u[:, 1]
    dx = WHEEL_RADIUS / 2.0 * (l + r) * jnp.cos(theta) * DT
    dy = WHEEL_RADIUS / 2.0 * (l + r) * jnp.sin(theta) * DT
    dtheta = WHEEL_RADIUS / WHEEL_BASE * (r - l) * DT
    return jnp.stack([dx, dy, dtheta], axis=1)


if __name__ == "__main__":
    key = jax.random.PRNGKey(0)
    k1, k2 = jax.random.split(key)

    # Small shape consistent with the module (n_state=3, n_ctrl=2).
    B = 8
    state = jax.random.normal(k1, (B, 3), dtype=jnp.float32)
    u = jax.random.normal(k2, (B, 2), dtype=jnp.float32)

    out = jax.block_until_ready(diffdrive_dx(state, u))
    ref = diffdrive_dx_ref(state, u)
    assert out.shape == (B, 3)
    assert jnp.allclose(out, ref, atol=1e-5, rtol=1e-5), (out, ref)

    # Exercise the 128-padding + ragged-last-block + 2-step-grid path.
    B2 = 2100  # pads to 2176 lanes -> 17 sublane rows, tile=16 -> 2 grid steps
    k3, k4 = jax.random.split(k2)
    state2 = jax.random.normal(k3, (B2, 3), dtype=jnp.float32)
    u2 = jax.random.normal(k4, (B2, 2), dtype=jnp.float32)
    out2 = jax.block_until_ready(diffdrive_dx(state2, u2))
    ref2 = diffdrive_dx_ref(state2, u2)
    assert out2.shape == (B2, 3)
    assert jnp.allclose(out2, ref2, atol=1e-5, rtol=1e-5)

    print("KERNEL_OK")
</pallas_src>

<mosaic_0001>
module attributes {stable_mosaic.version = 11 : i64} {
  func.func @_diffdrive_kernel(%arg0: i32, %arg1: memref<3x1x128xf32, #tpu.memory_space<vmem>>, %arg2: memref<2x1x128xf32, #tpu.memory_space<vmem>>, %arg3: memref<3x1x128xf32, #tpu.memory_space<vmem>>) attributes {dimension_semantics = [#tpu.dimension_semantics<parallel>], iteration_bounds = array<i64: 1>, scalar_prefetch = 0 : i64, scratch_operands = 0 : i64, tpu.core_type = #tpu.core_type<tc>, window_params = [{transform_indices = @transform_0, window_bounds = array<i64: 3, 1, 128>}, {transform_indices = @transform_1, window_bounds = array<i64: 2, 1, 128>}, {transform_indices = @transform_2, window_bounds = array<i64: 3, 1, 128>}]} {
    %c2 = arith.constant 2 : index
    %c0 = arith.constant 0 : index
    %c0_0 = arith.constant 0 : index
    %0 = vector.load %arg1[%c2, %c0, %c0_0] : memref<3x1x128xf32, #tpu.memory_space<vmem>>, vector<1x1x128xf32>
    %1 = vector.shape_cast %0 : vector<1x1x128xf32> to vector<1x128xf32>
    %c0_1 = arith.constant 0 : index
    %c0_2 = arith.constant 0 : index
    %c0_3 = arith.constant 0 : index
    %2 = vector.load %arg2[%c0_1, %c0_2, %c0_3] : memref<2x1x128xf32, #tpu.memory_space<vmem>>, vector<1x1x128xf32>
    %3 = vector.shape_cast %2 : vector<1x1x128xf32> to vector<1x128xf32>
    %c1 = arith.constant 1 : index
    %c0_4 = arith.constant 0 : index
    %c0_5 = arith.constant 0 : index
    %4 = vector.load %arg2[%c1, %c0_4, %c0_5] : memref<2x1x128xf32, #tpu.memory_space<vmem>>, vector<1x1x128xf32>
    %5 = vector.shape_cast %4 : vector<1x1x128xf32> to vector<1x128xf32>
    %6 = arith.addf %3, %5 : vector<1x128xf32>
    %cst = arith.constant 6.250000e-02 : f32
    %7 = vector.broadcast %cst : f32 to vector<1x128xf32>
    %8 = arith.mulf %7, %6 : vector<1x128xf32>
    %9 = math.cos %1 : vector<1x128xf32>
    %10 = arith.mulf %8, %9 : vector<1x128xf32>
    %c0_6 = arith.constant 0 : index
    %c0_7 = arith.constant 0 : index
    %c0_8 = arith.constant 0 : index
    %11 = vector.load %arg3[%c0_6, %c0_7, %c0_8] : memref<3x1x128xf32, #tpu.memory_space<vmem>>, vector<1x1x128xf32>
    %12 = vector.shape_cast %11 : vector<1x1x128xf32> to vector<1x128xf32>
    %13 = vector.shape_cast %10 : vector<1x128xf32> to vector<1x1x128xf32>
    tpu.vector_store %arg3[%c0_6, %c0_7, %c0_8], %13 {strides = array<i32>} : memref<3x1x128xf32, #tpu.memory_space<vmem>>, vector<1x1x128xf32>,
    %14 = math.sin %1 : vector<1x128xf32>
    %15 = arith.mulf %8, %14 : vector<1x128xf32>
    %c1_9 = arith.constant 1 : index
    %c0_10 = arith.constant 0 : index
    %c0_11 = arith.constant 0 : index
    %16 = vector.load %arg3[%c1_9, %c0_10, %c0_11] : memref<3x1x128xf32, #tpu.memory_space<vmem>>, vector<1x1x128xf32>
    %17 = vector.shape_cast %16 : vector<1x1x128xf32> to vector<1x128xf32>
    %18 = vector.shape_cast %15 : vector<1x128xf32> to vector<1x1x128xf32>
    tpu.vector_store %arg3[%c1_9, %c0_10, %c0_11], %18 {strides = array<i32>} : memref<3x1x128xf32, #tpu.memory_space<vmem>>, vector<1x1x128xf32>,
    %19 = arith.subf %5, %3 : vector<1x128xf32>
    %cst_12 = arith.constant 1.250000e-01 : f32
    %20 = vector.broadcast %cst_12 : f32 to vector<1x128xf32>
    %21 = arith.mulf %20, %19 : vector<1x128xf32>
    %c2_13 = arith.constant 2 : index
    %c0_14 = arith.constant 0 : index
    %c0_15 = arith.constant 0 : index
    %22 = vector.load %arg3[%c2_13, %c0_14, %c0_15] : memref<3x1x128xf32, #tpu.memory_space<vmem>>, vector<1x1x128xf32>
    %23 = vector.shape_cast %22 : vector<1x1x128xf32> to vector<1x128xf32>
    %24 = vector.shape_cast %21 : vector<1x128xf32> to vector<1x1x128xf32>
    tpu.vector_store %arg3[%c2_13, %c0_14, %c0_15], %24 {strides = array<i32>} : memref<3x1x128xf32, #tpu.memory_space<vmem>>, vector<1x1x128xf32>,
    return
  }
  func.func @transform_0(%arg0: i32) -> (i32, i32, i32) {
    %c0_i32 = arith.constant 0 : i32
    %c0_i32_0 = arith.constant 0 : i32
    %c0_i32_1 = arith.constant 0 : i32
    return %c0_i32, %arg0, %c0_i32_0 : i32, i32, i32
  }
  func.func @transform_1(%arg0: i32) -> (i32, i32, i32) {
    %c0_i32 = arith.constant 0 : i32
    %c0_i32_0 = arith.constant 0 : i32
    %c0_i32_1 = arith.constant 0 : i32
    return %c0_i32, %arg0, %c0_i32_0 : i32, i32, i32
  }
  func.func @transform_2(%arg0: i32) -> (i32, i32, i32) {
    %c0_i32 = arith.constant 0 : i32
    %c0_i32_0 = arith.constant 0 : i32
    %c0_i32_1 = arith.constant 0 : i32
    return %c0_i32, %arg0, %c0_i32_0 : i32, i32, i32
  }
}

</mosaic_0001>

<bundles_post_ra>
// kernel: tpu_custom_call.1
= control target key start
LH: loop header
LB: loop body
LE: loop exit
PB: predicated region body
PF: predicated region fallthrough
CT: control target
= control target key end

     0   :  { %7 = vsyncpa [#allocation3], 0  ;;  %s426_s0 = inlined_call_operand.hbm [shape: f32[3,1,128], index: 0, kind: input, shape index: {}]   ;;  %s427_s1 = inlined_call_operand.vmem [shape: f32[2,1,128], index: 1, kind: input, shape index: {}]   ;;  %s428_s2 = inlined_call_operand.hbm [shape: f32[3,1,128], index: 2, kind: output, shape index: {}]  }
   0x1   :  { %8 = vsyncpa [#allocation4], 0  ;;  %s341_s9 = smov [#allocation2]   ;;  %s293_s13 = scalar_lea.hbm %s426_s0, 48 }
   0x2   :  { %s14_s10 = sshll.u32 %s341_s9, 4  ;;  %p294_p0 = scmp.ne.s32.totalorder %s426_s0, %s293_s13  ;;  %s15_s10 = int_to_ptr.vmem [resolvable:$true] %s14_s10 }
   0x3   :  { %p297_p1 = scmp.lt.u32.totalorder %s293_s13, %s426_s0 }
   0x5   :  { %p299_p2 = pnand %p297_p1, %p294_p0 }
   0x7   :  { %302 = shalt.err (!%p299_p2)
}
   0x8   :  { %s303_s18 = scalar_lea.vmem %s15_s10, 48  ;;  %s307_s19 = scalar_lea.vmem %s15_s10, 64 }
   0x9   :  { %p304_p3 = scmp.ne.s32.totalorder %s15_s10, %s303_s18  ;;  %p308_p4 = scmp.lt.s32.totalorder %s15_s10, %s15_s10 }
   0xa   :  { %p309_p5 = scmp.lt.s32.totalorder %s307_s19, %s303_s18 }
   0xc   :  { %p310_p6 = por %p309_p5, %p308_p4 }
   0xe   :  { %p311_p7 = pnand %p310_p6, %p304_p3 }
  0x10   :  { %314 = shalt.err (!%p311_p7)
}
  0x11   :  { %s342_s20 = smov 16   ;;  %s343_s21 = smov 1  }
  0x12   :  { %20 = dma.hbm_to_vmem [thread:$0]  %s426_s0, 48, %s15_s10, [#allocation3], %s342_s20, %s342_s20, %s343_s21  }
  0x13   :  { %337 = dma.done.wait [#allocation3], 48  }
  0x14   :  { %338 = vsyncadd [#allocation3], 4294967248  ;;  %v381_v0 = vld [vmem:[#allocation2 + $0x2] sm:$0x1]  ;;  %v28_v1 = vld [vmem:[%s427_s1] sm:$0x1] }
  0x15   :  { %v266_v2 = vld [vmem:[%s427_s1 + $0x1] sm:$0x1]  ;;  %v36_v4 = vand.u32 2139095040, %v381_v0  ;;  %v33_v7 = vand.u32 2147483647, %v381_v0  ;;  %vm35_vm7 = vcmp.lt.s32.totalorder %v381_v0, 0  ;;  %vm125_vm15 = vweird.f32 %v381_v0 }
  0x16   :  { %v389_v3 = vadd.f32 %v266_v2, %v28_v1  ;;  %v245_v5 = vsub.f32 %v266_v2, %v28_v1  ;;  %v344_v17 = vmov 683565275   ;;  %v345_v19 = vmov 2475754826   ;;  %s350_s0 = smov [#allocation5]  }
  0x17   :  { %v37_v6 = vshrl.u32 %v36_v4, 23  ;;  %v40_v11 = vand.u32 8388607, %v33_v7  ;;  %v346_v21 = vmov 2131351028   ;;  %s254_s1 = sshll.u32 %s350_s0, 4  ;;  %s255_s1 = int_to_ptr.vmem [resolvable:$true] %s254_s1 }
  0x18   :  { %v246_v8 = vmul.f32 0.125, %v245_v5  ;;  %v347_v23 = vmov 2102212464   ;;  %v348_v25 = vmov 920167782   ;;  %s315_s28 = scalar_lea.vmem %s255_s1, 48  ;;  %p320_p9 = scmp.lt.s32.totalorder %s255_s1, %s255_s1 }
  0x19   :  { %v267_v9 = vadd.s32 4294967169, %v37_v6  ;;  %v41_v14 = vor.u32 8388608, %v40_v11  ;;  %v349_v32 = vmov 1326507024   ;;  %vm34_vm8 = vcmp.le.f32.partialorder %v33_v7, 0.7853982  ;;  %p316_p8 = scmp.ne.s32.totalorder %s255_s1, %s315_s28 }
  0x1a   :  { %248 = vst [vmem:[#allocation5 + $0x2] sm:$0x1] %v246_v8  ;;  %s319_s29 = scalar_lea.vmem %s255_s1, 64 }
  0x1b   :  { %v43_v10 = vadd.s32 1, %v267_v9  ;;  %v81_v34 = vshll.u32 %v41_v14, 8  ;;  %p321_p10 = scmp.lt.s32.totalorder %s319_s29, %s315_s28 }
  0x1d   :  { %vm44_vm0 = vcmp.gt.s32.totalorder %v43_v10, 0  ;;  %p322_p11 = por %p321_p10, %p320_p9 }
  0x1e   :  { %v45_v12 = vsel %vm44_vm0, %v43_v10, 0 }
  0x1f   :  { %v47_v13 = vand.u32 31, %v45_v12  ;;  %v46_v15 = vshrl.u32 %v45_v12, 5  ;;  %p323_p12 = pnand %p322_p11, %p316_p8 }
  0x21   :  { %v48_v16 = vsub.s32 32, %v47_v13  ;;  %v50_v18 = vshll.u32 %v344_v17, %v47_v13  ;;  %v53_v20 = vshll.u32 %v345_v19, %v47_v13  ;;  %v56_v22 = vshll.u32 %v346_v21, %v47_v13 }
  0x22   :  { %v59_v24 = vshll.u32 %v347_v23, %v47_v13  ;;  %v62_v26 = vshll.u32 %v348_v25, %v47_v13  ;;  %vm65_vm1 = vcmp.lt.s32.totalorder %v46_v15, 1  ;;  %vm68_vm2 = vcmp.lt.s32.totalorder %v46_v15, 4 }
  0x23   :  { %v49_v27 = vshrl.u32 %v344_v17, %v48_v16  ;;  %v51_v28 = vshrl.u32 %v345_v19, %v48_v16  ;;  %v54_v29 = vshrl.u32 %v346_v21, %v48_v16  ;;  %v57_v30 = vshrl.u32 %v347_v23, %v48_v16 }
  0x24   :  { %v60_v31 = vshrl.u32 %v348_v25, %v48_v16  ;;  %v63_v33 = vshrl.u32 %v349_v32, %v48_v16  ;;  %vm66_vm3 = vcmp.lt.s32.totalorder %v46_v15, 2  ;;  %vm67_vm4 = vcmp.lt.s32.totalorder %v46_v15, 3 }
  0x25   :  { %v52_v35 = vor.u32 %v51_v28, %v50_v18  ;;  %v55_v36 = vor.u32 %v54_v29, %v53_v20  ;;  %v58_v37 = vor.u32 %v57_v30, %v56_v22  ;;  %v32_v32 = vmul.f32 0.0625, %v389_v3 }
  0x26   :  { %v61_v38 = vor.u32 %v60_v31, %v59_v24  ;;  %v64_v39 = vor.u32 %v63_v33, %v62_v26 }
  0x27   :  { %v69_v40 = vsel %vm65_vm1, %v49_v27, %v52_v35  ;;  %v70_v41 = vsel %vm68_vm2, %v58_v37, 2102212464  ;;  %v73_v42 = vsel %vm65_vm1, %v52_v35, %v55_v36  ;;  %v77_v43 = vsel %vm65_vm1, %v55_v36, %v58_v37 }
  0x28   :  { %v71_v44 = vsel %vm67_vm4, %v55_v36, %v70_v41  ;;  %v74_v45 = vsel %vm68_vm2, %v61_v38, 920167782  ;;  %v78_v46 = vsel %vm68_vm2, %v64_v39, 1326507024 }
  0x29   :  { %v75_v47 = vsel %vm67_vm4, %v58_v37, %v74_v45  ;;  %v79_v48 = vsel %vm67_vm4, %v61_v38, %v78_v46  ;;  %v72_v49 = vsel %vm66_vm3, %v69_v40, %v71_v44 }
  0x2a   :  { %v76_v50 = vsel %vm66_vm3, %v73_v42, %v75_v47  ;;  %v80_v51 = vsel %vm66_vm3, %v77_v43, %v79_v48  ;;  %v88_v56 = vmul.u32 %v81_v34, %v72_v49 }
  0x2b   :  { %v395_v52 = vmul.u32.u64.low %v81_v34, %v80_v51  ;;  %v396_v53 = vmul.u32.u64.high %v81_v34, %v80_v51, %v395_v52  ;;  %v398_v54 = vmul.u32.u64.low %v81_v34, %v76_v50  ;;  %v399_v55 = vmul.u32.u64.high %v81_v34, %v76_v50, %v398_v54 }
  0x2d   :  { %vm90_vm5 = vc.u32 %v396_v53, %v398_v54  ;;  %v91_v57 = vadd.s32 1, %v399_v55  ;;  %v89_v6 = vadd.s32 %v398_v54, %v396_v53 }
  0x2f   :  { %v92_v58 = vsel %vm90_vm5, %v91_v57, %v399_v55 }
  0x30   :  { %v93_v59 = vadd.s32 %v92_v58, %v88_v56 }
  0x32   :  { %v94_v60 = vadd.s32 536870912, %v93_v59 }
  0x34   :  { %v95_v61 = vshrl.u32 %v94_v60, 30 }
  0x36   :  { %v96_v62 = vshll.u32 %v95_v61, 30  ;;  %v119_v19 = vsub.s32 4, %v95_v61 }
  0x38   :  { %v97_v63 = vsub.s32 %v93_v59, %v96_v62  ;;  %v120_v22 = vsel %vm35_vm7, %v119_v19, %v95_v61 }
  0x39   :  { %v122_v25 = vsel %vm34_vm8, 0, %v120_v22 }
  0x3a   :  { %v99_v1 = vsub.s32 0, %v97_v63  ;;  %v231_v26 = vadd.s32 3, %v122_v25  ;;  %v126_v27 = vand.u32 3, %v122_v25 }
  0x3c   :  { %v268_v2 = vmin.u32 %v99_v1, %v97_v63  ;;  %v232_v28 = vand.u32 3, %v231_v26  ;;  %vm131_vm9 = vcmp.eq.s32.totalorder %v126_v27, 2  ;;  %vm128_vm11 = vcmp.eq.s32.totalorder %v126_v27, 0 }
  0x3d   :  { %vm127_vm13 = vcmp.lt.s32.totalorder %v126_v27, 2 }
  0x3e   :  { %v101_v4 = vclz %v268_v2  ;;  %vm237_vm10 = vcmp.eq.s32.totalorder %v232_v28, 2  ;;  %vm234_vm12 = vcmp.eq.s32.totalorder %v232_v28, 0  ;;  %vm233_vm14 = vcmp.lt.s32.totalorder %v232_v28, 2 }
  0x40   :  { %v269_v5 = vadd.s32 4294967294, %v101_v4 }
  0x42   :  { %vm270_vm6 = vcmp.lt.s32.totalorder %v269_v5, 0 }
  0x43   :  { %v104_v8 = vsel %vm270_vm6, 0, %v269_v5 }
  0x44   :  { %v105_v9 = vsub.s32 32, %v104_v8  ;;  %v106_v10 = vshll.u32 %v97_v63, %v104_v8  ;;  %v109_v11 = vsub.s32 4294967266, %v104_v8 }
  0x46   :  { %v107_v12 = vshrl.u32 %v89_v6, %v105_v9  ;;  %v110_v13 = vadd.s32 127, %v109_v11 }
  0x48   :  { %v108_v14 = vor.u32 %v107_v12, %v106_v10  ;;  %v111_v15 = vshll.u32 %v110_v13, 23 }
  0x4a   :  { %v112_v16 = vor.u32 4788187, %v111_v15  ;;  %v115_v17 = vcvt.s32.f32 %v108_v14 }
  0x4c   :  { %v113_v18 = vand.u32 2147483647, %v112_v16 }
  0x4e   :  { %v116_v20 = vmul.f32 %v115_v17, %v113_v18 }
  0x50   :  { %v117_v21 = vxor.u32 2147483648, %v116_v20 }
  0x52   :  { %v118_v23 = vsel %vm35_vm7, %v117_v21, %v116_v20 }
  0x53   :  { %v121_v24 = vsel %vm34_vm8, %v381_v0, %v118_v23 }
  0x54   :  { %289 = vcosq.f32 %v121_v24 }
  0x55   :  { %291 = vsinq.f32 %v121_v24 }
  0x5e   :  { %v290_v29 = vpop.eup %289 }
  0x5f   :  { %v292_v30 = vpop.eup %291  ;;  %v132_v31 = vxor.u32 2147483648, %v290_v29 }
  0x60   :  { %v129_v7 = vxor.u32 2147483648, %v292_v30 }
  0x61   :  { %v133_v33 = vsel %vm131_vm9, %v132_v31, %v292_v30  ;;  %v239_v34 = vsel %vm237_vm10, %v132_v31, %v292_v30 }
  0x62   :  { %v130_v35 = vsel %vm128_vm11, %v290_v29, %v129_v7  ;;  %v236_v36 = vsel %vm234_vm12, %v290_v29, %v129_v7 }
  0x63   :  { %v134_v37 = vsel %vm127_vm13, %v130_v35, %v133_v33  ;;  %v240_v38 = vsel %vm233_vm14, %v236_v36, %v239_v34 }
  0x64   :  { %v135_v39 = vsel %vm125_vm15, nan, %v134_v37  ;;  %v241_v40 = vsel %vm125_vm15, nan, %v240_v38 }
  0x65   :  { %v136_v41 = vmul.f32 %v135_v39, %v32_v32  ;;  %v242_v42 = vmul.f32 %v241_v40, %v32_v32 }
  0x67   :  { %137 = vst [vmem:[#allocation5] sm:$0x1] %v136_v41  ;;  %244 = vst [vmem:[#allocation5 + $0x1] sm:$0x1] %v242_v42 }
  0x68   :  { %326 = shalt.err (!%p323_p12)
}
  0x69   :  { %s327_s4 = scalar_lea.hbm %s428_s2, 48 }
  0x6a   :  { %p328_p13 = scmp.ne.s32.totalorder %s428_s2, %s327_s4  ;;  %p331_p0 = scmp.lt.u32.totalorder %s327_s4, %s428_s2 }
  0x6c   :  { %p333_p1 = pnand %p331_p0, %p328_p13 }
  0x6e   :  { %336 = shalt.err (!%p333_p1)
}
  0x6f   :  { %260 = dma.vmem_to_hbm [thread:$0]  %s255_s1, 48, %s428_s2, [#allocation4], %s342_s20, %s342_s20, %s343_s21  }
  0x70   :  { %339 = dma.done.wait [#allocation4], 48  }
  0x71   :  { %340 = vsyncadd [#allocation4], 4294967248 }
  0x72   :  { %264 = vsyncpa [#allocation3], 1 }
  0x73   :  { %265 = vsyncpa [#allocation4], 1 }

</bundles_post_ra>
